<compile_context>
chip_gen: v5e
topology: v5e:2x2
jax: 0.10.0
libtpu: 0.0.40
codegen_flags: <defaults>
</compile_context>

<pallas_src>
import functools

import jax
import jax.numpy as jnp
from jax import lax
from jax.experimental import pallas as pl
from jax.experimental.pallas import tpu as pltpu


def _round_up(x, m):
    return ((x + m - 1) // m) * m


def _pick_tile(padded_dim, candidates):
    for t in candidates:
        if padded_dim % t == 0:
            return t
    return 128


def _pad2d(x, rp, cp):
    r, c = x.shape
    if r == rp and c == cp:          # skip the pad copy when already aligned
        return x
    return jnp.pad(x, ((0, rp - r), (0, cp - c)))


# ---------------------------------------------------------------------------
# Fast path: everything fits in VMEM -> single fused kernel, no intermediates.
# ---------------------------------------------------------------------------
def _fused_kernel(x_ref, w_ref, c_ref, o_ref):
    x = x_ref[...]
    y = jnp.dot(x, w_ref[...], preferred_element_type=jnp.float32)
    g = lax.dot_general(y, y, (((1,), (1,)), ((), ())),
                        preferred_element_type=jnp.float32)
    g = g + lax.dot_general(x, x, (((1,), (1,)), ((), ())),
                            preferred_element_type=jnp.float32)
    o_ref[...] = g + c_ref[0, 0]


def _fused_small(Xf, Wf, c2d):
    B, D = Xf.shape
    _, K = Wf.shape
    Bp = _round_up(B, 8)
    Dp = _round_up(D, 128)
    Kp = _round_up(K, 128)
    Xp = _pad2d(Xf, Bp, Dp)
    Wp = _pad2d(Wf, Dp, Kp)
    out = pl.pallas_call(
        _fused_kernel,
        out_shape=jax.ShapeDtypeStruct((Bp, Bp), jnp.float32),
        grid=(1,),
        in_specs=[
            pl.BlockSpec((Bp, Dp), lambda i: (0, 0)),
            pl.BlockSpec((Dp, Kp), lambda i: (0, 0)),
            pl.BlockSpec((1, 1), lambda i: (0, 0), memory_space=pltpu.SMEM),
        ],
        out_specs=pl.BlockSpec((Bp, Bp), lambda i: (0, 0)),
    )(Xp, Wp, c2d)
    return out[:B, :B]


# ---------------------------------------------------------------------------
# Kernel 1: tiled matmul  Y = X @ W, accumulating directly into the f32 output
# block (output block index is constant over k, so it stays VMEM-resident).
# ---------------------------------------------------------------------------
def _matmul_kernel(a_ref, b_ref, o_ref):
    @pl.when(pl.program_id(2) == 0)
    def _():
        o_ref[...] = jnp.zeros_like(o_ref)

    o_ref[...] += jnp.dot(a_ref[...], b_ref[...],
                          preferred_element_type=jnp.float32)


def _tiled_matmul(a, b, *, tm, tn, tk):
    M, K = a.shape
    _, N = b.shape
    return pl.pallas_call(
        _matmul_kernel,
        out_shape=jax.ShapeDtypeStruct((M, N), jnp.float32),
        grid=(M // tm, N // tn, K // tk),
        in_specs=[
            pl.BlockSpec((tm, tk), lambda i, j, k: (i, k)),
            pl.BlockSpec((tk, tn), lambda i, j, k: (k, j)),
        ],
        out_specs=pl.BlockSpec((tm, tn), lambda i, j, k: (i, j)),
        compiler_params=pltpu.CompilerParams(
            dimension_semantics=("parallel", "parallel", "arbitrary")),
    )(a, b)


# ---------------------------------------------------------------------------
# Kernel 2: symmetric Gram  G = Y Y^T + X X^T, upper-triangle blocks only.
# 1-D grid over the nb*(nb+1)/2 (i<=j) block pairs (scalar-prefetched ids),
# reduction grid spans the Y columns then the X columns; pl.when selects which
# operand pair contributes at each k step (clamped index_maps keep the idle
# input's block index constant, so no redundant DMA traffic is issued).
# ---------------------------------------------------------------------------
def _gram_sym_kernel(i_ids_ref, j_ids_ref, yl_ref, yr_ref, xl_ref, xr_ref,
                     o_ref, *, kb_y):
    k = pl.program_id(1)

    @pl.when(k == 0)
    def _():
        o_ref[...] = jnp.zeros_like(o_ref)

    @pl.when(k < kb_y)
    def _():
        o_ref[...] += lax.dot_general(
            yl_ref[...], yr_ref[...],
            dimension_numbers=(((1,), (1,)), ((), ())),
            preferred_element_type=jnp.float32)

    @pl.when(k >= kb_y)
    def _():
        o_ref[...] += lax.dot_general(
            xl_ref[...], xr_ref[...],
            dimension_numbers=(((1,), (1,)), ((), ())),
            preferred_element_type=jnp.float32)


def _tiled_gram_sym(Y, X, *, tb, tky, tkx):
    Bp, Kp = Y.shape
    _, Dp = X.shape
    nb = Bp // tb
    kb_y = Kp // tky
    kb_x = Dp // tkx

    pairs_i, pairs_j = [], []
    for i in range(nb):
        for j in range(i, nb):
            pairs_i.append(i)
            pairs_j.append(j)
    i_ids = jnp.asarray(pairs_i, jnp.int32)
    j_ids = jnp.asarray(pairs_j, jnp.int32)
    n_pairs = len(pairs_i)

    kernel = functools.partial(_gram_sym_kernel, kb_y=kb_y)

    return pl.pallas_call(
        kernel,
        out_shape=jax.ShapeDtypeStruct((Bp, Bp), jnp.float32),
        grid_spec=pltpu.PrefetchScalarGridSpec(
            num_scalar_prefetch=2,
            grid=(n_pairs, kb_y + kb_x),
            in_specs=[
                pl.BlockSpec((tb, tky),
                             lambda p, k, ii, jj: (ii[p], jnp.minimum(k, kb_y - 1))),
                pl.BlockSpec((tb, tky),
                             lambda p, k, ii, jj: (jj[p], jnp.minimum(k, kb_y - 1))),
                pl.BlockSpec((tb, tkx),
                             lambda p, k, ii, jj: (ii[p], jnp.maximum(k - kb_y, 0))),
                pl.BlockSpec((tb, tkx),
                             lambda p, k, ii, jj: (jj[p], jnp.maximum(k - kb_y, 0))),
            ],
            out_specs=pl.BlockSpec((tb, tb),
                                   lambda p, k, ii, jj: (ii[p], jj[p])),
        ),
        compiler_params=pltpu.CompilerParams(
            dimension_semantics=("parallel", "arbitrary")),
    )(i_ids, j_ids, Y, Y, X, X)


# ---------------------------------------------------------------------------
# Wrapper:  out = X @ (W @ W.T + I) @ X.T + c
# ---------------------------------------------------------------------------
@functools.partial(jax.jit, static_argnames=("mxu_dtype",))
def custom_kernel(X, W, c, *, mxu_dtype=jnp.float32):
    B, D = X.shape
    Dw, K = W.shape
    assert D == Dw, "X and W contraction dims must match"

    Xf = X.astype(jnp.float32)
    Wf = W.astype(jnp.float32)
    c_f32 = jnp.asarray(c, jnp.float32).reshape(())

    # -------- small-shape fast path: one fused kernel, no HBM intermediates --
    if max(B, D, K) <= 512:
        return _fused_small(Xf, Wf, c_f32.reshape(1, 1))

    # ------------------------------ tiled path ------------------------------
    Bp = _round_up(B, 128)
    Dp = _round_up(D, 128)
    Kp = _round_up(K, 128)

    tB = _pick_tile(Bp, (256, 128))                  # output rows/cols tile
    tD = _pick_tile(Dp, (512, 384, 256, 128))        # reduction over D
    tK = _pick_tile(Kp, (512, 384, 256, 128))        # matmul N / reduction over K

    Xp = _pad2d(Xf, Bp, Dp).astype(mxu_dtype)
    Wp = _pad2d(Wf, Dp, Kp).astype(mxu_dtype)

    # Y = X @ W  (f32 output, f32 accumulation; padded rows/cols stay zero)
    Yp = _tiled_matmul(Xp, Wp, tm=tB, tn=tK, tk=tD)
    Yop = Yp if mxu_dtype == jnp.float32 else Yp.astype(mxu_dtype)

    # Upper-triangle blocks of G = Y Y^T + X X^T  (no concat, no extra HBM pass)
    G = _tiled_gram_sym(Yop, Xp, tb=tB, tky=tK, tkx=tD)

    # Mirror lower triangle (Gram is symmetric) and add c in the same XLA pass.
    rows = lax.broadcasted_iota(jnp.int32, (Bp, Bp), 0)
    cols = lax.broadcasted_iota(jnp.int32, (Bp, Bp), 1)
    out_full = jnp.where(rows <= cols, G, G.T) + c_f32
    return out_full[:B, :B]


if __name__ == "__main__":
    # shapes from the original module
    batch_size = 2
    input_dim = 2
    output_dim = 3

    key = jax.random.PRNGKey(0)
    kx, kw = jax.random.split(key)
    X = jax.random.normal(kx, (batch_size, input_dim), dtype=jnp.float32)
    W = jax.random.normal(kw, (input_dim, output_dim), dtype=jnp.float32)
    c = jnp.float32(1.0)

    out = jax.block_until_ready(custom_kernel(X, W, c))
    ref = X @ (W @ W.T + jnp.eye(input_dim, dtype=jnp.float32)) @ X.T + c
    assert out.shape == (batch_size, batch_size)
    assert jnp.allclose(out, ref, atol=1e-4, rtol=1e-4), (out, ref)

    # also exercise the tiled (large-shape) path: two kernels + symmetric Gram
    B2, D2, K2 = 640, 96, 80
    kx2, kw2 = jax.random.split(jax.random.PRNGKey(1))
    X2 = jax.random.normal(kx2, (B2, D2), dtype=jnp.float32)
    W2 = jax.random.normal(kw2, (D2, K2), dtype=jnp.float32)
    out2 = jax.block_until_ready(custom_kernel(X2, W2, c))
    ref2 = X2 @ (W2 @ W2.T + jnp.eye(D2, dtype=jnp.float32)) @ X2.T + c
    assert out2.shape == (B2, B2)
    rel_err = float(jnp.max(jnp.abs(out2 - ref2)) / jnp.max(jnp.abs(ref2)))
    assert rel_err < 1e-4, rel_err

    print("KERNEL_OK")
</pallas_src>

<mosaic_0001>
module attributes {stable_mosaic.version = 11 : i64} {
  func.func @_fused_kernel(%arg0: i32, %arg1: memref<8x128xf32, #tpu.memory_space<vmem>>, %arg2: memref<128x128xf32, #tpu.memory_space<vmem>>, %arg3: memref<1x1xf32, #tpu.memory_space<smem>>, %arg4: memref<8x8xf32, #tpu.memory_space<vmem>>) attributes {dimension_semantics = [#tpu.dimension_semantics<arbitrary>], iteration_bounds = array<i64: 1>, scalar_prefetch = 0 : i64, scratch_operands = 0 : i64, tpu.core_type = #tpu.core_type<tc>, window_params = [{pipeline_mode = #tpu.pipeline_mode<synchronous>, transform_indices = @transform_0, window_bounds = array<i64: 8, 128>}, {pipeline_mode = #tpu.pipeline_mode<synchronous>, transform_indices = @transform_1, window_bounds = array<i64: 128, 128>}, {transform_indices = @transform_2, window_bounds = array<i64: 1, 1>}, {pipeline_mode = #tpu.pipeline_mode<synchronous>, transform_indices = @transform_3, window_bounds = array<i64: 8, 8>}]} {
    %c0 = arith.constant 0 : index
    %c0_0 = arith.constant 0 : index
    %0 = vector.load %arg1[%c0, %c0_0] : memref<8x128xf32, #tpu.memory_space<vmem>>, vector<8x128xf32>
    %c0_1 = arith.constant 0 : index
    %c0_2 = arith.constant 0 : index
    %1 = vector.load %arg2[%c0_1, %c0_2] : memref<128x128xf32, #tpu.memory_space<vmem>>, vector<128x128xf32>
    %cst = arith.constant dense<0.000000e+00> : vector<8x128xf32>
    %2 = tpu.matmul %0, %1, %cst {dimension_numbers = #tpu.dot_dimension_numbers<[1], [0], [0], [1], [0, 0, 1, 1], [], []>} : vector<8x128xf32>, vector<128x128xf32>, vector<8x128xf32> -> vector<8x128xf32>
    %cst_3 = arith.constant dense<0.000000e+00> : vector<8x8xf32>
    %3 = tpu.matmul %2, %2, %cst_3 {dimension_numbers = #tpu.dot_dimension_numbers<[1], [1], [0], [0], [0, 0, 1, 0], [], []>} : vector<8x128xf32>, vector<8x128xf32>, vector<8x8xf32> -> vector<8x8xf32>
    %cst_4 = arith.constant dense<0.000000e+00> : vector<8x8xf32>
    %4 = tpu.matmul %0, %0, %cst_4 {dimension_numbers = #tpu.dot_dimension_numbers<[1], [1], [0], [0], [0, 0, 1, 0], [], []>} : vector<8x128xf32>, vector<8x128xf32>, vector<8x8xf32> -> vector<8x8xf32>
    %5 = arith.addf %3, %4 : vector<8x8xf32>
    %c0_5 = arith.constant 0 : index
    %c0_6 = arith.constant 0 : index
    %6 = memref.load %arg3[%c0_5, %c0_6] : memref<1x1xf32, #tpu.memory_space<smem>>
    %7 = vector.broadcast %6 : f32 to vector<8x8xf32>
    %8 = arith.addf %5, %7 : vector<8x8xf32>
    %c0_7 = arith.constant 0 : index
    %c0_8 = arith.constant 0 : index
    %9 = vector.load %arg4[%c0_7, %c0_8] : memref<8x8xf32, #tpu.memory_space<vmem>>, vector<8x8xf32>
    tpu.vector_store %arg4[%c0_7, %c0_8], %8 {strides = array<i32>} : memref<8x8xf32, #tpu.memory_space<vmem>>, vector<8x8xf32>,
    return
  }
  func.func @transform_0(%arg0: i32) -> (i32, i32) {
    %c0_i32 = arith.constant 0 : i32
    %c0_i32_0 = arith.constant 0 : i32
    %c0_i32_1 = arith.constant 0 : i32
    return %c0_i32, %c0_i32_0 : i32, i32
  }
  func.func @transform_1(%arg0: i32) -> (i32, i32) {
    %c0_i32 = arith.constant 0 : i32
    %c0_i32_0 = arith.constant 0 : i32
    %c0_i32_1 = arith.constant 0 : i32
    return %c0_i32, %c0_i32_0 : i32, i32
  }
  func.func @transform_2(%arg0: i32) -> (i32, i32) {
    %c0_i32 = arith.constant 0 : i32
    %c0_i32_0 = arith.constant 0 : i32
    %c0_i32_1 = arith.constant 0 : i32
    return %c0_i32, %c0_i32_0 : i32, i32
  }
  func.func @transform_3(%arg0: i32) -> (i32, i32) {
    %c0_i32 = arith.constant 0 : i32
    %c0_i32_0 = arith.constant 0 : i32
    %c0_i32_1 = arith.constant 0 : i32
    return %c0_i32, %c0_i32_0 : i32, i32
  }
}

</mosaic_0001>

<bundles_post_ra>
// kernel: custom_kernel.1
= control target key start
LH: loop header
LB: loop body
LE: loop exit
PB: predicated region body
PF: predicated region fallthrough
CT: control target
= control target key end

     0   :  { %vm95_vm0 = vcmask 64512   ;;  %s178_s1 = inlined_call_operand.vmem [shape: f32[128,128], index: 1, kind: input, shape index: {}]   ;;  %s179_s0 = inlined_call_operand.vmem [shape: f32[8,128], index: 0, kind: input, shape index: {}]   ;;  %s180_s2 = inlined_call_operand.<no memory space> [shape: f32[1,1], index: 2, kind: input, shape index: {}]   ;;  %s181_s3 = inlined_call_operand.vmem [shape: f32[8,8], index: 3, kind: output, shape index: {}]  }
   0x1   :  { %v31_v0 = vld [vmem:[%s178_s1 + $0x78] sm:$0xff]  ;;  %v30_v1 = vld [vmem:[%s178_s1 + $0x70] sm:$0xff]  ;;  %v29_v2 = vld [vmem:[%s178_s1 + $0x68] sm:$0xff]  ;;  %v93_v20 = vstv %s180_s2 }
   0x2   :  { %32 = vmatpush.msra.mxu0 %v31_v0  ;;  %v28_v3 = vld [vmem:[%s178_s1 + $0x60] sm:$0xff]  ;;  %v27_v5 = vld [vmem:[%s178_s1 + $0x58] sm:$0xff]  ;;  %v26_v6 = vld [vmem:[%s178_s1 + $0x50] sm:$0xff] }
   0x3   :  { %v15_v4 = vld [vmem:[%s179_s0] sm:$0xff]  ;;  %v25_v7 = vld [vmem:[%s178_s1 + $0x48] sm:$0xff]  ;;  %v23_v9 = vld [vmem:[%s178_s1 + $0x38] sm:$0xff] }
   0x4   :  { %33 = vmatpush.msra.mxu0 %v30_v1  ;;  %67 = vmatpush.xpose.msra.mxu1 %v15_v4  ;;  %v24_v8 = vld [vmem:[%s178_s1 + $0x40] sm:$0xff]  ;;  %v22_v10 = vld [vmem:[%s178_s1 + $0x30] sm:$0xff]  ;;  %v21_v11 = vld [vmem:[%s178_s1 + $0x28] sm:$0xff] }
   0x5   :  { %v20_v12 = vld [vmem:[%s178_s1 + $0x20] sm:$0xff]  ;;  %v19_v13 = vld [vmem:[%s178_s1 + $0x18] sm:$0xff]  ;;  %v18_v14 = vld [vmem:[%s178_s1 + $0x10] sm:$0xff] }
   0x6   :  { %34 = vmatpush.msra.mxu0 %v29_v2  ;;  %v17_v15 = vld [vmem:[%s178_s1 + $0x8] sm:$0xff]  ;;  %v16_v16 = vld [vmem:[%s178_s1] sm:$0xff] }
   0x7   :  { %68 = vmatmul.f32.vlgmr.msra.gmra.mxu1 %v15_v4 }
   0x8   :  { %35 = vmatpush.msra.mxu0 %v28_v3 }
   0xa   :  { %36 = vmatpush.msra.mxu0 %v27_v5 }
   0xc   :  { %37 = vmatpush.msra.mxu0 %v26_v6 }
   0xe   :  { %38 = vmatpush.msra.mxu0 %v25_v7 }
  0x10   :  { %39 = vmatpush.msra.mxu0 %v24_v8 }
  0x12   :  { %40 = vmatpush.msra.mxu0 %v23_v9 }
  0x14   :  { %41 = vmatpush.msra.mxu0 %v22_v10 }
  0x16   :  { %42 = vmatpush.msra.mxu0 %v21_v11 }
  0x18   :  { %43 = vmatpush.msra.mxu0 %v20_v12 }
  0x1a   :  { %44 = vmatpush.msra.mxu0 %v19_v13 }
  0x1c   :  { %45 = vmatpush.msra.mxu0 %v18_v14 }
  0x1e   :  { %46 = vmatpush.msra.mxu0 %v17_v15 }
  0x20   :  { %47 = vmatpush.msra.mxu0 %v16_v16 }
  0x21   :  { %48 = vmatmul.f32.vlgmr.msra.gmra.mxu0 %v15_v4 }
  0x84   :  { %v69_v18 = vpop.f32.mrf.mxu1 }
  0x9e   :  { %v49_v17 = vpop.f32.mrf.mxu0 }
  0x9f   :  { %87 = vmatpush.xpose.msra.mxu2 %v49_v17 }
  0xa2   :  { %88 = vmatmul.f32.vlgmr.msra.gmra.mxu2 %v49_v17 }
 0x125   :  { %v89_v19 = vpop.f32.mrf.mxu2 }
 0x126   :  { %v90_v21 = vadd.f32 %v89_v19, %v69_v18 }
 0x128   :  { %v94_v22 = vadd.f32 %v93_v20, %v90_v21 }
 0x12a   :  { %96 = vst.msk [vmem:[%s181_s3] sm:$0xff] %vm95_vm0, %v94_v22 }

</bundles_post_ra>
